<compile_context>
chip_gen: v7x
topology: tpu7x:2x2x1
jax: 0.10.0
libtpu: 0.0.40
codegen_flags: <defaults>
</compile_context>

<pallas_src>
import functools

import jax
import jax.numpy as jnp
from jax import lax
from jax.experimental import pallas as pl
from jax.experimental.pallas import tpu as pltpu


_VMEM_LIMIT = 48 * 1024 * 1024  # fits v5e/v6e (128 MiB) and v7x (64 MiB) with headroom


# -----------------------------------------------------------------------------
# Tiling helpers: pick a tile <= target that is a multiple of `mult`, and pad
# the dimension up to a multiple of that tile (no whole-dim fallback).
# -----------------------------------------------------------------------------
def _choose_tile(dim, target, mult):
    if dim <= target:
        return dim, dim  # single full-extent block: always layout-legal
    tile = max((target // mult) * mult, mult)
    padded = ((dim + tile - 1) // tile) * tile
    return tile, padded


def _pad_rows(x, rows):
    pad = rows - x.shape[0]
    return x if pad == 0 else jnp.pad(x, ((0, pad), (0, 0)))


# -----------------------------------------------------------------------------
# Kernel 1a: A @ B   (A streamed bf16, upcast to f32 in-kernel; f32 accumulator)
# -----------------------------------------------------------------------------
def _mm_nn_acc_kernel(a_ref, b_ref, o_ref, acc_ref):
    @pl.when(pl.program_id(1) == 0)
    def _init():
        acc_ref[...] = jnp.zeros_like(acc_ref)

    acc_ref[...] += jnp.dot(a_ref[...].astype(jnp.float32), b_ref[...],
                            preferred_element_type=jnp.float32)

    @pl.when(pl.program_id(1) == pl.num_programs(1) - 1)
    def _fin():
        o_ref[...] = acc_ref[...]


def _mm_nn_simple_kernel(a_ref, b_ref, o_ref):
    o_ref[...] = jnp.dot(a_ref[...].astype(jnp.float32), b_ref[...],
                         preferred_element_type=jnp.float32)


def matmul_nn(a_bf16, b_f32, *, tm, tk):
    """(M, K) bf16 @ (K, D) f32 -> (M, D) f32.  Caller guarantees M % tm == 0
    and K % tk == 0 (via zero-padding)."""
    m, k = a_bf16.shape
    d = b_f32.shape[1]
    if k == tk:  # contraction fits one block: no accumulator, fully parallel grid
        return pl.pallas_call(
            _mm_nn_simple_kernel,
            out_shape=jax.ShapeDtypeStruct((m, d), jnp.float32),
            grid=(m // tm,),
            in_specs=[pl.BlockSpec((tm, k), lambda i: (i, 0)),
                      pl.BlockSpec((k, d), lambda i: (0, 0))],
            out_specs=pl.BlockSpec((tm, d), lambda i: (i, 0)),
            compiler_params=pltpu.CompilerParams(
                dimension_semantics=("parallel",),
                vmem_limit_bytes=_VMEM_LIMIT),
        )(a_bf16, b_f32)
    return pl.pallas_call(
        _mm_nn_acc_kernel,
        out_shape=jax.ShapeDtypeStruct((m, d), jnp.float32),
        grid=(m // tm, k // tk),  # reduction axis last
        in_specs=[pl.BlockSpec((tm, tk), lambda i, j: (i, j)),
                  pl.BlockSpec((tk, d), lambda i, j: (j, 0))],
        out_specs=pl.BlockSpec((tm, d), lambda i, j: (i, 0)),
        scratch_shapes=[pltpu.VMEM((tm, d), jnp.float32)],
        compiler_params=pltpu.CompilerParams(
            dimension_semantics=("parallel", "arbitrary"),
            vmem_limit_bytes=_VMEM_LIMIT),
    )(a_bf16, b_f32)


# -----------------------------------------------------------------------------
# Kernel 1b: A^T @ B for A (K, M) -- reads the same (untransposed) bf16 A buffer.
# -----------------------------------------------------------------------------
_TN_DIMS = (((0,), (0,)), ((), ()))  # contract dim 0 of A with dim 0 of B


def _mm_tn_acc_kernel(a_ref, b_ref, o_ref, acc_ref):
    @pl.when(pl.program_id(1) == 0)
    def _init():
        acc_ref[...] = jnp.zeros_like(acc_ref)

    acc_ref[...] += lax.dot_general(a_ref[...].astype(jnp.float32), b_ref[...],
                                    _TN_DIMS, preferred_element_type=jnp.float32)

    @pl.when(pl.program_id(1) == pl.num_programs(1) - 1)
    def _fin():
        o_ref[...] = acc_ref[...]


def _mm_tn_simple_kernel(a_ref, b_ref, o_ref):
    o_ref[...] = lax.dot_general(a_ref[...].astype(jnp.float32), b_ref[...],
                                 _TN_DIMS, preferred_element_type=jnp.float32)


def matmul_tn(a_bf16, b_f32, *, tm, tk):
    """A^T @ B for A (K, M) bf16, B (K, D) f32 -> (M, D) f32 (no materialized
    transpose).  Caller guarantees M % tm == 0 and K % tk == 0."""
    k, m = a_bf16.shape
    d = b_f32.shape[1]
    if k == tk:
        return pl.pallas_call(
            _mm_tn_simple_kernel,
            out_shape=jax.ShapeDtypeStruct((m, d), jnp.float32),
            grid=(m // tm,),
            in_specs=[pl.BlockSpec((k, tm), lambda i: (0, i)),
                      pl.BlockSpec((k, d), lambda i: (0, 0))],
            out_specs=pl.BlockSpec((tm, d), lambda i: (i, 0)),
            compiler_params=pltpu.CompilerParams(
                dimension_semantics=("parallel",),
                vmem_limit_bytes=_VMEM_LIMIT),
        )(a_bf16, b_f32)
    return pl.pallas_call(
        _mm_tn_acc_kernel,
        out_shape=jax.ShapeDtypeStruct((m, d), jnp.float32),
        grid=(m // tm, k // tk),  # reduction axis last
        in_specs=[pl.BlockSpec((tk, tm), lambda i, j: (j, i)),
                  pl.BlockSpec((tk, d), lambda i, j: (j, 0))],
        out_specs=pl.BlockSpec((tm, d), lambda i, j: (i, 0)),
        scratch_shapes=[pltpu.VMEM((tm, d), jnp.float32)],
        compiler_params=pltpu.CompilerParams(
            dimension_semantics=("parallel", "arbitrary"),
            vmem_limit_bytes=_VMEM_LIMIT),
    )(a_bf16, b_f32)


def lightgcn_propagate(r_norm, user_emb0, item_emb0, n_layers,
                       *, tile_users=1024, tile_items=2048):
    """LightGCN propagation on the bipartite block:
         U_{l+1} = R_norm   @ I_l
         I_{l+1} = R_norm^T @ U_l   (same bf16 R buffer, transposed contraction)
       Returns layer-mean embeddings (users, items) in f32."""
    nu, ni = r_norm.shape
    t_u, nu_p = _choose_tile(nu, tile_users, 8)     # user axis: sublane role
    t_i, ni_p = _choose_tile(ni, tile_items, 128)   # item axis: lane role in R blocks
    # Pad ONCE (before the layer loop); padded rows/cols are zero and stay zero.
    r_bf = jnp.pad(r_norm, ((0, nu_p - nu), (0, ni_p - ni))).astype(jnp.bfloat16)
    u = _pad_rows(user_emb0.astype(jnp.float32), nu_p)
    v = _pad_rows(item_emb0.astype(jnp.float32), ni_p)
    u_sum, v_sum = u, v
    for _ in range(n_layers):  # static unroll; layer chain is inherently serial
        u_new = matmul_nn(r_bf, v, tm=t_u, tk=t_i)   # R   @ I_l
        v_new = matmul_tn(r_bf, u, tm=t_i, tk=t_u)   # R^T @ U_l
        u, v = u_new, v_new
        u_sum = u_sum + u
        v_sum = v_sum + v
    scale = 1.0 / float(n_layers + 1)
    return (u_sum * scale)[:nu], (v_sum * scale)[:ni]


# -----------------------------------------------------------------------------
# Kernel 2: user_lm = (0.1*phi1 + 0.9*phi2) @ user_lm_T  (blend on VPU in f32,
# single f32 MXU pass; hoisted out of the per-batch path)
# -----------------------------------------------------------------------------
def _user_lm_kernel(phi1_ref, phi2_ref, ulm_ref, out_ref):
    phi = phi1_ref[...] * 0.1 + phi2_ref[...] * 0.9
    out_ref[...] = jnp.dot(phi, ulm_ref[...], preferred_element_type=jnp.float32)


def compute_user_lm(phi1_sub, phi2_sub, ulm_sub, *, tile_m=512):
    nu, k = phi1_sub.shape
    lm_dim = ulm_sub.shape[1]
    tm, nu_p = _choose_tile(nu, tile_m, 8)
    phi1_p = _pad_rows(phi1_sub.astype(jnp.float32), nu_p)
    phi2_p = _pad_rows(phi2_sub.astype(jnp.float32), nu_p)
    out = pl.pallas_call(
        _user_lm_kernel,
        out_shape=jax.ShapeDtypeStruct((nu_p, lm_dim), jnp.float32),
        grid=(nu_p // tm,),
        in_specs=[pl.BlockSpec((tm, k), lambda i: (i, 0)),
                  pl.BlockSpec((tm, k), lambda i: (i, 0)),
                  pl.BlockSpec((k, lm_dim), lambda i: (0, 0))],
        out_specs=pl.BlockSpec((tm, lm_dim), lambda i: (i, 0)),
        compiler_params=pltpu.CompilerParams(
            dimension_semantics=("parallel",),
            vmem_limit_bytes=_VMEM_LIMIT),
    )(phi1_p, phi2_p, ulm_sub.astype(jnp.float32))
    return out[:nu]


# -----------------------------------------------------------------------------
# Kernel 3: per-pair scores, batch tiled on the lane axis (lane-dense output).
#   gamma = 0.5 * sum(u_id * i_id) + sum(u_lm * i_lm)
# -----------------------------------------------------------------------------
def _score_kernel(uid_ref, iid_ref, ulm_ref, ilm_ref, out_ref):
    g_id = jnp.sum(uid_ref[...] * iid_ref[...], axis=0, keepdims=True)  # (1, tb)
    g_lm = jnp.sum(ulm_ref[...] * ilm_ref[...], axis=0, keepdims=True)  # (1, tb)
    out_ref[...] = 0.5 * g_id + g_lm


def compute_scores(u_id, i_id, u_lm, i_lm, *, tile_b=1024):
    b = u_id.shape[0]
    tb, b_p = _choose_tile(b, tile_b, 128)

    def prep(x):  # wrapper-side transpose: batch onto the lane axis, then pad
        x = x.astype(jnp.float32).T  # (d, b)
        return x if b_p == b else jnp.pad(x, ((0, 0), (0, b_p - b)))

    uid_t, iid_t, ulm_t, ilm_t = map(prep, (u_id, i_id, u_lm, i_lm))
    d_id, d_lm = uid_t.shape[0], ulm_t.shape[0]
    out = pl.pallas_call(
        _score_kernel,
        out_shape=jax.ShapeDtypeStruct((1, b_p), jnp.float32),
        grid=(b_p // tb,),
        in_specs=[pl.BlockSpec((d_id, tb), lambda i: (0, i)),
                  pl.BlockSpec((d_id, tb), lambda i: (0, i)),
                  pl.BlockSpec((d_lm, tb), lambda i: (0, i)),
                  pl.BlockSpec((d_lm, tb), lambda i: (0, i))],
        out_specs=pl.BlockSpec((1, tb), lambda i: (0, i)),
        compiler_params=pltpu.CompilerParams(
            dimension_semantics=("parallel",),
            vmem_limit_bytes=_VMEM_LIMIT),
    )(uid_t, iid_t, ulm_t, ilm_t)
    return out[0, :b]


# -----------------------------------------------------------------------------
# Glue: parameter setup (deterministic), graph construction, forward wrappers
# -----------------------------------------------------------------------------
def l2_normalize(x, axis=1, eps=1e-12):
    norm = jnp.sqrt(jnp.sum(x * x, axis=axis, keepdims=True))
    return x / jnp.maximum(norm, eps)


def build_norm_r(r):
    """Normalized bipartite interaction block of getSparseGraph():
       D_u^{-1/2} R D_i^{-1/2}; the full G is [[0, Rn], [Rn^T, 0]]."""
    du = jnp.sum(r, axis=1)
    di = jnp.sum(r, axis=0)
    du_is = jnp.where(du > 0, 1.0 / jnp.sqrt(du), 0.0)
    di_is = jnp.where(di > 0, 1.0 / jnp.sqrt(di), 0.0)
    return r * du_is[:, None] * di_is[None, :]


def init_params(key, num_users, num_items, latent_dim, lm_dim, p_dim, q_dim):
    ks = jax.random.split(key, 7)
    emb_user = 0.1 * jax.random.normal(ks[0], (num_users, latent_dim), jnp.float32)
    emb_item = 0.1 * jax.random.normal(ks[1], (num_items, latent_dim), jnp.float32)
    user_lm_T = l2_normalize(jax.random.normal(ks[2], (q_dim, lm_dim), jnp.float32))
    item_lm = l2_normalize(jax.random.normal(ks[3], (num_items, lm_dim), jnp.float32))
    phi3 = jax.random.normal(ks[4], (num_users, p_dim), jnp.float32)
    phi4 = jax.random.normal(ks[5], (p_dim, q_dim), jnp.float32)
    phi2 = jax.random.normal(ks[6], (num_users, q_dim), jnp.float32)
    phi1 = phi3 @ phi4  # precomputed once in __init_weight (parameter setup)
    return dict(emb_user=emb_user, emb_item=emb_item, user_lm_T=user_lm_T,
                item_lm=item_lm, phi1=phi1, phi2=phi2)


def lightgcn_computer(params, r_norm, *, n_layers, selected_k):
    """LightGCN.computer(): batch-independent, hoisted out of the per-batch path."""
    users_id_emb, items_id_emb = lightgcn_propagate(
        r_norm, params["emb_user"], params["emb_item"], n_layers)
    users_lm_emb = compute_user_lm(params["phi1"][:, :selected_k],
                                   params["phi2"][:, :selected_k],
                                   params["user_lm_T"][:selected_k, :])
    items_lm_emb = params["item_lm"]
    return users_id_emb, items_id_emb, users_lm_emb, items_lm_emb


def lightgcn_score(users_id_emb, items_id_emb, users_lm_emb, items_lm_emb,
                   users, items):
    """Per-batch part of forward(users, items)."""
    u_id = users_id_emb[users]
    i_id = items_id_emb[items]
    u_lm = users_lm_emb[users]
    i_lm = items_lm_emb[items]
    return compute_scores(u_id, i_id, u_lm, i_lm)


def lightgcn_forward(params, r_norm, users, items, *, n_layers, selected_k):
    """Drop-in equivalent of LightGCN.forward(users, items)."""
    embs = lightgcn_computer(params, r_norm, n_layers=n_layers,
                             selected_k=selected_k)
    return lightgcn_score(*embs, users, items)


# -----------------------------------------------------------------------------
# Pure-JAX f32 reference (dense N x N graph, exactly the torch forward math)
# -----------------------------------------------------------------------------
def _reference_forward(params, r_norm, users, items, *, n_layers, selected_k):
    nu, ni = r_norm.shape
    n = nu + ni
    g = jnp.zeros((n, n), jnp.float32)
    g = g.at[:nu, nu:].set(r_norm)
    g = g.at[nu:, :nu].set(r_norm.T)
    all_emb = jnp.concatenate([params["emb_user"], params["emb_item"]], axis=0)
    cur, acc = all_emb, all_emb
    for _ in range(n_layers):
        cur = g @ cur
        acc = acc + cur
    light = acc / (n_layers + 1)
    u_id = light[:nu][users]
    i_id = light[nu:][items]
    ulm = (0.1 * params["phi1"][:, :selected_k]
           + 0.9 * params["phi2"][:, :selected_k]) @ params["user_lm_T"][:selected_k]
    u_lm = ulm[users]
    i_lm = params["item_lm"][items]
    return 0.5 * jnp.sum(u_id * i_id, axis=1) + jnp.sum(u_lm * i_lm, axis=1)


if __name__ == "__main__":
    key = jax.random.PRNGKey(0)

    num_users, num_items = 64, 64
    latent_dim = 32        # config['latent_dim_rec']
    lm_dim = 32            # language-model embedding dim
    n_layers = 2           # config['lightGCN_n_layers']
    selected_k = 16        # config['selected_k']
    p_dim, q_dim = 24, 32  # phi3: (num_users, p_dim), phi4: (p_dim, q_dim)
    batch = 8

    k_param, k_graph, k_users, k_items = jax.random.split(key, 4)
    params = init_params(k_param, num_users, num_items, latent_dim, lm_dim,
                         p_dim, q_dim)

    # synthetic user-item interaction matrix -> normalized bipartite block
    r = (jax.random.uniform(k_graph, (num_users, num_items)) < 0.3).astype(jnp.float32)
    r_norm = build_norm_r(r)

    users = jax.random.randint(k_users, (batch,), 0, num_users, dtype=jnp.int32)
    items = jax.random.randint(k_items, (batch,), 0, num_items, dtype=jnp.int32)

    # computer() is batch-independent: hoist it out of the per-batch path.
    computer = jax.jit(functools.partial(
        lightgcn_computer, n_layers=n_layers, selected_k=selected_k))
    embs = computer(params, r_norm)
    jax.block_until_ready(embs)

    score = jax.jit(lightgcn_score)
    gamma = score(*embs, users, items)
    jax.block_until_ready(gamma)

    # validate the bf16-streamed / f32-compute path against the dense f32 reference
    ref = _reference_forward(params, r_norm, users, items,
                             n_layers=n_layers, selected_k=selected_k)
    assert gamma.shape == (batch,) and gamma.dtype == jnp.float32
    assert bool(jnp.all(jnp.isfinite(gamma)))
    assert float(jnp.max(jnp.abs(gamma - ref))) < 0.1
    print("KERNEL_OK")
</pallas_src>

<mosaic_0001>
module attributes {stable_mosaic.version = 11 : i64} {
  func.func @_mm_nn_simple_kernel(%arg0: i32, %arg1: memref<64x64xbf16, #tpu.memory_space<vmem>>, %arg2: memref<64x32xf32, #tpu.memory_space<vmem>>, %arg3: memref<64x32xf32, #tpu.memory_space<vmem>>) attributes {dimension_semantics = [#tpu.dimension_semantics<parallel>], iteration_bounds = array<i64: 1>, scalar_prefetch = 0 : i64, scratch_operands = 0 : i64, tpu.core_type = #tpu.core_type<tc>, window_params = [{transform_indices = @transform_0, window_bounds = array<i64: 64, 64>}, {pipeline_mode = #tpu.pipeline_mode<synchronous>, transform_indices = @transform_1, window_bounds = array<i64: 64, 32>}, {transform_indices = @transform_2, window_bounds = array<i64: 64, 32>}]} {
    %c0 = arith.constant 0 : index
    %c0_0 = arith.constant 0 : index
    %0 = vector.load %arg1[%c0, %c0_0] : memref<64x64xbf16, #tpu.memory_space<vmem>>, vector<64x64xbf16>
    %1 = arith.extf %0 : vector<64x64xbf16> to vector<64x64xf32>
    %c0_1 = arith.constant 0 : index
    %c0_2 = arith.constant 0 : index
    %2 = vector.load %arg2[%c0_1, %c0_2] : memref<64x32xf32, #tpu.memory_space<vmem>>, vector<64x32xf32>
    %cst = arith.constant dense<0.000000e+00> : vector<64x32xf32>
    %3 = tpu.matmul %1, %2, %cst {dimension_numbers = #tpu.dot_dimension_numbers<[1], [0], [0], [1], [0, 0, 1, 1], [], []>} : vector<64x64xf32>, vector<64x32xf32>, vector<64x32xf32> -> vector<64x32xf32>
    %c0_3 = arith.constant 0 : index
    %c0_4 = arith.constant 0 : index
    %4 = vector.load %arg3[%c0_3, %c0_4] : memref<64x32xf32, #tpu.memory_space<vmem>>, vector<64x32xf32>
    tpu.vector_store %arg3[%c0_3, %c0_4], %3 {strides = array<i32>} : memref<64x32xf32, #tpu.memory_space<vmem>>, vector<64x32xf32>,
    return
  }
  func.func @transform_0(%arg0: i32) -> (i32, i32) {
    %c0_i32 = arith.constant 0 : i32
    %c0_i32_0 = arith.constant 0 : i32
    return %arg0, %c0_i32 : i32, i32
  }
  func.func @transform_1(%arg0: i32) -> (i32, i32) {
    %c0_i32 = arith.constant 0 : i32
    %c0_i32_0 = arith.constant 0 : i32
    %c0_i32_1 = arith.constant 0 : i32
    return %c0_i32, %c0_i32_0 : i32, i32
  }
  func.func @transform_2(%arg0: i32) -> (i32, i32) {
    %c0_i32 = arith.constant 0 : i32
    %c0_i32_0 = arith.constant 0 : i32
    return %arg0, %c0_i32 : i32, i32
  }
}

module attributes {stable_mosaic.version = 11 : i64} {
  func.func @_mm_tn_simple_kernel(%arg0: i32, %arg1: memref<64x64xbf16, #tpu.memory_space<vmem>>, %arg2: memref<64x32xf32, #tpu.memory_space<vmem>>, %arg3: memref<64x32xf32, #tpu.memory_space<vmem>>) attributes {dimension_semantics = [#tpu.dimension_semantics<parallel>], iteration_bounds = array<i64: 1>, scalar_prefetch = 0 : i64, scratch_operands = 0 : i64, tpu.core_type = #tpu.core_type<tc>, window_params = [{transform_indices = @transform_0, window_bounds = array<i64: 64, 64>}, {pipeline_mode = #tpu.pipeline_mode<synchronous>, transform_indices = @transform_1, window_bounds = array<i64: 64, 32>}, {transform_indices = @transform_2, window_bounds = array<i64: 64, 32>}]} {
    %c0 = arith.constant 0 : index
    %c0_0 = arith.constant 0 : index
    %0 = vector.load %arg1[%c0, %c0_0] : memref<64x64xbf16, #tpu.memory_space<vmem>>, vector<64x64xbf16>
    %1 = arith.extf %0 : vector<64x64xbf16> to vector<64x64xf32>
    %c0_1 = arith.constant 0 : index
    %c0_2 = arith.constant 0 : index
    %2 = vector.load %arg2[%c0_1, %c0_2] : memref<64x32xf32, #tpu.memory_space<vmem>>, vector<64x32xf32>
    %cst = arith.constant dense<0.000000e+00> : vector<64x32xf32>
    %3 = tpu.matmul %1, %2, %cst {dimension_numbers = #tpu.dot_dimension_numbers<[0], [0], [1], [1], [0, 1, 1, 1], [], []>} : vector<64x64xf32>, vector<64x32xf32>, vector<64x32xf32> -> vector<64x32xf32>
    %c0_3 = arith.constant 0 : index
    %c0_4 = arith.constant 0 : index
    %4 = vector.load %arg3[%c0_3, %c0_4] : memref<64x32xf32, #tpu.memory_space<vmem>>, vector<64x32xf32>
    tpu.vector_store %arg3[%c0_3, %c0_4], %3 {strides = array<i32>} : memref<64x32xf32, #tpu.memory_space<vmem>>, vector<64x32xf32>,
    return
  }
  func.func @transform_0(%arg0: i32) -> (i32, i32) {
    %c0_i32 = arith.constant 0 : i32
    %c0_i32_0 = arith.constant 0 : i32
    return %c0_i32, %arg0 : i32, i32
  }
  func.func @transform_1(%arg0: i32) -> (i32, i32) {
    %c0_i32 = arith.constant 0 : i32
    %c0_i32_0 = arith.constant 0 : i32
    %c0_i32_1 = arith.constant 0 : i32
    return %c0_i32, %c0_i32_0 : i32, i32
  }
  func.func @transform_2(%arg0: i32) -> (i32, i32) {
    %c0_i32 = arith.constant 0 : i32
    %c0_i32_0 = arith.constant 0 : i32
    return %arg0, %c0_i32 : i32, i32
  }
}

module attributes {stable_mosaic.version = 11 : i64} {
  func.func @_user_lm_kernel(%arg0: i32, %arg1: memref<64x16xf32, #tpu.memory_space<vmem>>, %arg2: memref<64x16xf32, #tpu.memory_space<vmem>>, %arg3: memref<16x32xf32, #tpu.memory_space<vmem>>, %arg4: memref<64x32xf32, #tpu.memory_space<vmem>>) attributes {dimension_semantics = [#tpu.dimension_semantics<parallel>], iteration_bounds = array<i64: 1>, scalar_prefetch = 0 : i64, scratch_operands = 0 : i64, tpu.core_type = #tpu.core_type<tc>, window_params = [{transform_indices = @transform_0, window_bounds = array<i64: 64, 16>}, {transform_indices = @transform_1, window_bounds = array<i64: 64, 16>}, {pipeline_mode = #tpu.pipeline_mode<synchronous>, transform_indices = @transform_2, window_bounds = array<i64: 16, 32>}, {transform_indices = @transform_3, window_bounds = array<i64: 64, 32>}]} {
    %c0 = arith.constant 0 : index
    %c0_0 = arith.constant 0 : index
    %0 = vector.load %arg1[%c0, %c0_0] : memref<64x16xf32, #tpu.memory_space<vmem>>, vector<64x16xf32>
    %cst = arith.constant 1.000000e-01 : f32
    %1 = vector.broadcast %cst : f32 to vector<64x16xf32>
    %2 = arith.mulf %0, %1 : vector<64x16xf32>
    %c0_1 = arith.constant 0 : index
    %c0_2 = arith.constant 0 : index
    %3 = vector.load %arg2[%c0_1, %c0_2] : memref<64x16xf32, #tpu.memory_space<vmem>>, vector<64x16xf32>
    %cst_3 = arith.constant 0.899999976 : f32
    %4 = vector.broadcast %cst_3 : f32 to vector<64x16xf32>
    %5 = arith.mulf %3, %4 : vector<64x16xf32>
    %6 = arith.addf %2, %5 : vector<64x16xf32>
    %c0_4 = arith.constant 0 : index
    %c0_5 = arith.constant 0 : index
    %7 = vector.load %arg3[%c0_4, %c0_5] : memref<16x32xf32, #tpu.memory_space<vmem>>, vector<16x32xf32>
    %cst_6 = arith.constant dense<0.000000e+00> : vector<64x32xf32>
    %8 = tpu.matmul %6, %7, %cst_6 {dimension_numbers = #tpu.dot_dimension_numbers<[1], [0], [0], [1], [0, 0, 1, 1], [], []>} : vector<64x16xf32>, vector<16x32xf32>, vector<64x32xf32> -> vector<64x32xf32>
    %c0_7 = arith.constant 0 : index
    %c0_8 = arith.constant 0 : index
    %9 = vector.load %arg4[%c0_7, %c0_8] : memref<64x32xf32, #tpu.memory_space<vmem>>, vector<64x32xf32>
    tpu.vector_store %arg4[%c0_7, %c0_8], %8 {strides = array<i32>} : memref<64x32xf32, #tpu.memory_space<vmem>>, vector<64x32xf32>,
    return
  }
  func.func @transform_0(%arg0: i32) -> (i32, i32) {
    %c0_i32 = arith.constant 0 : i32
    %c0_i32_0 = arith.constant 0 : i32
    return %arg0, %c0_i32 : i32, i32
  }
  func.func @transform_1(%arg0: i32) -> (i32, i32) {
    %c0_i32 = arith.constant 0 : i32
    %c0_i32_0 = arith.constant 0 : i32
    return %arg0, %c0_i32 : i32, i32
  }
  func.func @transform_2(%arg0: i32) -> (i32, i32) {
    %c0_i32 = arith.constant 0 : i32
    %c0_i32_0 = arith.constant 0 : i32
    %c0_i32_1 = arith.constant 0 : i32
    return %c0_i32, %c0_i32_0 : i32, i32
  }
  func.func @transform_3(%arg0: i32) -> (i32, i32) {
    %c0_i32 = arith.constant 0 : i32
    %c0_i32_0 = arith.constant 0 : i32
    return %arg0, %c0_i32 : i32, i32
  }
}

</mosaic_0001>

<bundles_post_ra>
// kernel: lightgcn_computer.8
= control target key start
LH: loop header
LB: loop body
LE: loop exit
PB: predicated region body
PF: predicated region fallthrough
CT: control target
= control target key end

     0   :  { %vm67_vm0 = vcmask 523264   ;;  %vm197_vm1 = vcmask 261120   ;;  %s397_s0 = inlined_call_operand.vmem [shape: bf16[64,64], index: 0, kind: input, shape index: {}]   ;;  %s398_s1 = inlined_call_operand.vmem [shape: f32[64,32], index: 1, kind: input, shape index: {}]   ;;  %s399_s2 = inlined_call_operand.vmem [shape: f32[64,32], index: 2, kind: output, shape index: {}]  }
   0x1   :  { %v219_v0 = vld [vmem:[%s397_s0] sm:$0xff]   ;;  %v28_v3 = vld [vmem:[%s398_s1 + $0x8] sm:$0xff]  ;;  %v29_v4 = vld [vmem:[%s398_s1 + $0x10] sm:$0xff] }
   0x2   :  { %v220_v1 = vunpack.c.l.bf16 %v219_v0  ;;  %v27_v2 = vld [vmem:[%s398_s1] sm:$0xff]  ;;  %v30_v5 = vld [vmem:[%s398_s1 + $0x18] sm:$0xff]  ;;  %v221_v6 = vunpack.c.h.bf16 %v219_v0  ;;  %v234_v9 = vld [vmem:[%s397_s0 + $0x8] sm:$0xff]  }
   0x3   :  { %v281_v7 = vpack.c.bf16 %v28_v3, %v27_v2  ;;  %v285_v8 = vpack.c.bf16 %v30_v5, %v29_v4  ;;  %v31_v10 = vld [vmem:[%s398_s1 + $0x20] sm:$0xff]  ;;  %v32_v11 = vld [vmem:[%s398_s1 + $0x28] sm:$0xff]  ;;  %v224_v12 = vunpack.c.l.bf16 %v234_v9  ;;  %v33_v14 = vld [vmem:[%s398_s1 + $0x30] sm:$0xff]  ;;  %v225_v16 = vunpack.c.h.bf16 %v234_v9 }
   0x4   :  { %35 = vxpose.xlu0.b32.start [1/8] (short) (narrow) %v220_v1, 64  ;;  %v289_v13 = vpack.c.bf16 %v32_v11, %v31_v10  ;;  %v34_v15 = vld [vmem:[%s398_s1 + $0x38] sm:$0xff]  ;;  %v235_v18 = vld [vmem:[%s397_s0 + $0x10] sm:$0xff]  }
   0x5   :  { %282 = vmatprep.subr.bf16.mxu0 %v281_v7  ;;  %297 = vmatprep.subr.bf16.mxu1 %v281_v7  ;;  %v293_v17 = vpack.c.bf16 %v34_v15, %v33_v14  ;;  %v228_v19 = vunpack.c.l.bf16 %v235_v18  ;;  %v229_v20 = vunpack.c.h.bf16 %v235_v18  ;;  %v236_v21 = vld [vmem:[%s397_s0 + $0x18] sm:$0xff]  }
   0x6   :  { %284 = vmatpush3.bf16.msra.mxu0 %v281_v7  ;;  %301 = vmatpush3.bf16.msra.mxu1 %v281_v7  ;;  %v232_v22 = vunpack.c.l.bf16 %v236_v21  ;;  %v233_v23 = vunpack.c.h.bf16 %v236_v21 }
   0x7   :  { %286 = vmatprep.subr.bf16.mxu0 %v285_v8  ;;  %298 = vmatprep.subr.bf16.mxu1 %v285_v8 }
   0x8   :  { %36 = vxpose.xlu0.b32.cont [2/8] (short) (narrow) %v221_v6, 64 }
   0xa   :  { %288 = vmatpush3.bf16.msra.mxu0 %v285_v8  ;;  %302 = vmatpush3.bf16.msra.mxu1 %v285_v8 }
   0xb   :  { %290 = vmatprep.subr.bf16.mxu0 %v289_v13  ;;  %299 = vmatprep.subr.bf16.mxu1 %v289_v13 }
   0xc   :  { %37 = vxpose.xlu0.b32.cont [3/8] (short) (narrow) %v224_v12, 64 }
   0xe   :  { %292 = vmatpush3.bf16.msra.mxu0 %v289_v13  ;;  %303 = vmatpush3.bf16.msra.mxu1 %v289_v13 }
   0xf   :  { %294 = vmatprep.subr.bf16.mxu0 %v293_v17  ;;  %300 = vmatprep.subr.bf16.mxu1 %v293_v17 }
  0x10   :  { %38 = vxpose.xlu0.b32.cont [4/8] (short) (narrow) %v225_v16, 64 }
  0x12   :  { %296 = vmatpush3.bf16.msra.mxu0 %v293_v17  ;;  %304 = vmatpush3.bf16.msra.mxu1 %v293_v17 }
  0x14   :  { %39 = vxpose.xlu0.b32.cont [5/8] (short) (narrow) %v228_v19, 64 }
  0x18   :  { %40 = vxpose.xlu0.b32.cont [6/8] (short) (narrow) %v229_v20, 64 }
  0x1c   :  { %41 = vxpose.xlu0.b32.cont [7/8] (short) (narrow) %v232_v22, 64 }
  0x20   :  { %42 = vxpose.xlu0.b32.end [8/8] (short) (narrow) %v233_v23, 64 }
  0x84   :  { %v51_v24 = vpop.trf.xlu0 }
  0x85   :  { %269 = vmatprep.mubr.msk.f32.mxu0 %vm67_vm0, %v51_v24 }
  0x88   :  { %v52_v25 = vpop.trf.xlu0 }
  0x89   :  { %270 = vmatmul.mubr.msk.f32.vlgmr.msra.gmra.mrb[0].mxu0 %vm67_vm0, %v52_v25 }
  0x8c   :  { %v53_v26 = vpop.trf.xlu0 }
  0x8d   :  { %272 = vmatprep.mubr.msk.f32.mxu0 %vm67_vm0, %v53_v26 }
  0x90   :  { %v54_v27 = vpop.trf.xlu0 }
  0x91   :  { %273 = vmatmul.mubr.msk.f32.gmra.mrb[2].mxu0 %vm67_vm0, %v54_v27 }
  0x94   :  { %v55_v28 = vpop.trf.xlu0 }
  0x95   :  { %275 = vmatprep.mubr.msk.f32.mxu1 %vm67_vm0, %v55_v28 }
  0x98   :  { %v56_v29 = vpop.trf.xlu0 }
  0x99   :  { %276 = vmatmul.mubr.msk.f32.vlgmr.msra.gmra.mrb[0].mxu1 %vm67_vm0, %v56_v29 }
  0x9c   :  { %v57_v30 = vpop.trf.xlu0 }
  0x9d   :  { %278 = vmatprep.mubr.msk.f32.mxu1 %vm67_vm0, %v57_v30 }
  0xa0   :  { %v58_v31 = vpop.trf.xlu0 }
  0xa1   :  { %279 = vmatmul.mubr.msk.f32.gmra.mrb[2].mxu1 %vm67_vm0, %v58_v31 }
 0x15c   :  { %v271_v32 = vpop.f32.mrb[0].mxu0 }
 0x15d   :  { %199 = vst.msk [vmem:[%s399_s2 + $0x8] sm:$0xff] %vm197_vm1, %v271_v32  ;;  %v158_v33 = vpop.f32.mrb[1].mxu0 }
 0x15e   :  { %198 = vst.msk [vmem:[%s399_s2] sm:$0xff] %vm197_vm1, %v158_v33 }
 0x164   :  { %v274_v34 = vpop.f32.mrb[2].mxu0 }
 0x165   :  { %201 = vst.msk [vmem:[%s399_s2 + $0x18] sm:$0xff] %vm197_vm1, %v274_v34  ;;  %v168_v35 = vpop.f32.mrb[3].mxu0 }
 0x166   :  { %200 = vst.msk [vmem:[%s399_s2 + $0x10] sm:$0xff] %vm197_vm1, %v168_v35 }
 0x16c   :  { %v277_v36 = vpop.f32.mrb[0].mxu1 }
 0x16d   :  { %203 = vst.msk [vmem:[%s399_s2 + $0x28] sm:$0xff] %vm197_vm1, %v277_v36  ;;  %v178_v37 = vpop.f32.mrb[1].mxu1 }
 0x16e   :  { %202 = vst.msk [vmem:[%s399_s2 + $0x20] sm:$0xff] %vm197_vm1, %v178_v37 }
 0x174   :  { %v280_v38 = vpop.f32.mrb[2].mxu1 }
 0x175   :  { %205 = vst.msk [vmem:[%s399_s2 + $0x38] sm:$0xff] %vm197_vm1, %v280_v38  ;;  %v188_v39 = vpop.f32.mrb[3].mxu1 }
 0x176   :  { %204 = vst.msk [vmem:[%s399_s2 + $0x30] sm:$0xff] %vm197_vm1, %v188_v39 }

// kernel: lightgcn_computer.5
= control target key start
LH: loop header
LB: loop body
LE: loop exit
PB: predicated region body
PF: predicated region fallthrough
CT: control target
= control target key end

     0   :  { %vm35_vm0 = vcmask 523264   ;;  %vm165_vm1 = vcmask 261120   ;;  %s364_s1 = inlined_call_operand.vmem [shape: f32[64,32], index: 1, kind: input, shape index: {}]   ;;  %s365_s0 = inlined_call_operand.vmem [shape: bf16[64,64], index: 0, kind: input, shape index: {}]   ;;  %s366_s2 = inlined_call_operand.vmem [shape: f32[64,32], index: 2, kind: output, shape index: {}]  }
   0x1   :  { %v27_v0 = vld [vmem:[%s364_s1] sm:$0xff]  ;;  %v28_v1 = vld [vmem:[%s364_s1 + $0x8] sm:$0xff]  ;;  %v29_v2 = vld [vmem:[%s364_s1 + $0x10] sm:$0xff] }
   0x2   :  { %v249_v3 = vpack.c.bf16 %v28_v1, %v27_v0  ;;  %v30_v4 = vld [vmem:[%s364_s1 + $0x18] sm:$0xff]  ;;  %v31_v6 = vld [vmem:[%s364_s1 + $0x20] sm:$0xff]  ;;  %v32_v7 = vld [vmem:[%s364_s1 + $0x28] sm:$0xff] }
   0x3   :  { %v253_v5 = vpack.c.bf16 %v30_v4, %v29_v2  ;;  %v187_v8 = vld [vmem:[%s365_s0] sm:$0xff]   ;;  %v203_v10 = vld [vmem:[%s365_s0 + $0x10] sm:$0xff]   ;;  %v257_v12 = vpack.c.bf16 %v32_v7, %v31_v6  ;;  %v34_v14 = vld [vmem:[%s364_s1 + $0x38] sm:$0xff] }
   0x4   :  { %250 = vmatprep.subr.bf16.mxu0 %v249_v3  ;;  %265 = vmatprep.subr.bf16.mxu1 %v249_v3  ;;  %v188_v9 = vunpack.c.l.bf16 %v187_v8  ;;  %v196_v11 = vunpack.c.l.bf16 %v203_v10  ;;  %v33_v13 = vld [vmem:[%s364_s1 + $0x30] sm:$0xff]  ;;  %v202_v16 = vld [vmem:[%s365_s0 + $0x8] sm:$0xff]   ;;  %v204_v17 = vld [vmem:[%s365_s0 + $0x18] sm:$0xff]   ;;  %v189_v18 = vunpack.c.h.bf16 %v187_v8  ;;  %v197_v19 = vunpack.c.h.bf16 %v203_v10 }
   0x5   :  { %252 = vmatpush3.bf16.msra.mxu0 %v249_v3  ;;  %269 = vmatpush3.bf16.msra.mxu1 %v249_v3  ;;  %v261_v15 = vpack.c.bf16 %v34_v14, %v33_v13  ;;  %v192_v20 = vunpack.c.l.bf16 %v202_v16  ;;  %v200_v21 = vunpack.c.l.bf16 %v204_v17  ;;  %v193_v22 = vunpack.c.h.bf16 %v202_v16 }
   0x6   :  { %254 = vmatprep.subr.bf16.mxu0 %v253_v5  ;;  %266 = vmatprep.subr.bf16.mxu1 %v253_v5  ;;  %v201_v23 = vunpack.c.h.bf16 %v204_v17 }
   0x7   :  { %237 = vmatprep.mubr.msk.f32.mxu0 %vm35_vm0, %v188_v9  ;;  %243 = vmatprep.mubr.msk.f32.mxu1 %vm35_vm0, %v196_v11 }
   0x9   :  { %256 = vmatpush3.bf16.msra.mxu0 %v253_v5  ;;  %270 = vmatpush3.bf16.msra.mxu1 %v253_v5 }
   0xa   :  { %258 = vmatprep.subr.bf16.mxu0 %v257_v12  ;;  %267 = vmatprep.subr.bf16.mxu1 %v257_v12 }
   0xd   :  { %260 = vmatpush3.bf16.msra.mxu0 %v257_v12  ;;  %271 = vmatpush3.bf16.msra.mxu1 %v257_v12 }
   0xe   :  { %262 = vmatprep.subr.bf16.mxu0 %v261_v15  ;;  %268 = vmatprep.subr.bf16.mxu1 %v261_v15 }
  0x11   :  { %264 = vmatpush3.bf16.msra.mxu0 %v261_v15  ;;  %272 = vmatpush3.bf16.msra.mxu1 %v261_v15 }
  0x14   :  { %238 = vmatmul.mubr.msk.f32.vlgmr.msra.gmra.mrb[0].mxu0 %vm35_vm0, %v189_v18  ;;  %244 = vmatmul.mubr.msk.f32.vlgmr.msra.gmra.mrb[0].mxu1 %vm35_vm0, %v197_v19 }
  0x15   :  { %240 = vmatprep.mubr.msk.f32.mxu0 %vm35_vm0, %v192_v20  ;;  %246 = vmatprep.mubr.msk.f32.mxu1 %vm35_vm0, %v200_v21 }
  0x18   :  { %241 = vmatmul.mubr.msk.f32.gmra.mrb[2].mxu0 %vm35_vm0, %v193_v22  ;;  %247 = vmatmul.mubr.msk.f32.gmra.mrb[2].mxu1 %vm35_vm0, %v201_v23 }
  0xe7   :  { %v239_v24 = vpop.f32.mrb[0].mxu0  ;;  %v245_v25 = vpop.f32.mrb[0].mxu1 }
  0xe8   :  { %167 = vst.msk [vmem:[%s366_s2 + $0x8] sm:$0xff] %vm165_vm1, %v239_v24  ;;  %171 = vst.msk [vmem:[%s366_s2 + $0x28] sm:$0xff] %vm165_vm1, %v245_v25  ;;  %v126_v26 = vpop.f32.mrb[1].mxu0  ;;  %v146_v27 = vpop.f32.mrb[1].mxu1 }
  0xe9   :  { %166 = vst.msk [vmem:[%s366_s2] sm:$0xff] %vm165_vm1, %v126_v26  ;;  %170 = vst.msk [vmem:[%s366_s2 + $0x20] sm:$0xff] %vm165_vm1, %v146_v27 }
  0xeb   :  { %v242_v28 = vpop.f32.mrb[2].mxu0  ;;  %v248_v29 = vpop.f32.mrb[2].mxu1 }
  0xec   :  { %169 = vst.msk [vmem:[%s366_s2 + $0x18] sm:$0xff] %vm165_vm1, %v242_v28  ;;  %173 = vst.msk [vmem:[%s366_s2 + $0x38] sm:$0xff] %vm165_vm1, %v248_v29  ;;  %v136_v30 = vpop.f32.mrb[3].mxu0  ;;  %v156_v31 = vpop.f32.mrb[3].mxu1 }
  0xed   :  { %168 = vst.msk [vmem:[%s366_s2 + $0x10] sm:$0xff] %vm165_vm1, %v136_v30  ;;  %172 = vst.msk [vmem:[%s366_s2 + $0x30] sm:$0xff] %vm165_vm1, %v156_v31 }

// kernel: lightgcn_computer.9
= control target key start
LH: loop header
LB: loop body
LE: loop exit
PB: predicated region body
PF: predicated region fallthrough
CT: control target
= control target key end

     0   :  { %vm56_vm0 = vcmask 130048   ;;  %vm186_vm1 = vcmask 261120   ;;  %s353_s2 = inlined_call_operand.vmem [shape: f32[16,32], index: 2, kind: input, shape index: {}]   ;;  %s354_s0 = inlined_call_operand.vmem [shape: f32[64,16], index: 0, kind: input, shape index: {}]   ;;  %s355_s1 = inlined_call_operand.vmem [shape: f32[64,16], index: 1, kind: input, shape index: {}]   ;;  %s356_s3 = inlined_call_operand.vmem [shape: f32[64,32], index: 3, kind: output, shape index: {}]  }
   0x1   :  { %v54_v0 = vld [vmem:[%s353_s2] sm:$0xff]  ;;  %v55_v1 = vld [vmem:[%s353_s2 + $0x8] sm:$0xff]  ;;  %v16_v19 = vld [vmem:[%s354_s0 + $0x10] sm:$0xff] }
   0x2   :  { %v14_v2 = vld [vmem:[%s354_s0] sm:$0xff]  ;;  %v233_v3 = vpack.c.bf16 %v55_v1, %v54_v0  ;;  %v15_v11 = vld [vmem:[%s354_s0 + $0x8] sm:$0xff]  ;;  %v24_v22 = vmul.f32 0.1, %v16_v19  ;;  %v32_v24 = vld [vmem:[%s355_s1 + $0x10] sm:$0xff] }
   0x3   :  { %v22_v4 = vmul.f32 0.1, %v14_v2  ;;  %v30_v5 = vld [vmem:[%s355_s1] sm:$0xff]  ;;  %v31_v12 = vld [vmem:[%s355_s1 + $0x8] sm:$0xff]  ;;  %v23_v16 = vmul.f32 0.1, %v15_v11 }
   0x4   :  { %v18_v6 = vld [vmem:[%s354_s0 + $0x20] sm:$0xff]  ;;  %v38_v8 = vmul.f32 0.9, %v30_v5  ;;  %234 = vmatprep.subr.bf16.mxu0 %v233_v3  ;;  %237 = vmatprep.subr.bf16.mxu1 %v233_v3  ;;  %v19_v13 = vld [vmem:[%s354_s0 + $0x28] sm:$0xff]  ;;  %v39_v17 = vmul.f32 0.9, %v31_v12 }
   0x5   :  { %v34_v7 = vld [vmem:[%s355_s1 + $0x20] sm:$0xff]  ;;  %v26_v9 = vmul.f32 0.1, %v18_v6  ;;  %236 = vmatpush3.bf16.msra.mxu0 %v233_v3  ;;  %238 = vmatpush3.bf16.msra.mxu1 %v233_v3  ;;  %v35_v18 = vld [vmem:[%s355_s1 + $0x28] sm:$0xff]  ;;  %v27_v20 = vmul.f32 0.1, %v19_v13 }
   0x6   :  { %v42_v10 = vmul.f32 0.9, %v34_v7  ;;  %v46_v14 = vadd.f32 %v38_v8, %v22_v4  ;;  %v43_v21 = vmul.f32 0.9, %v35_v18  ;;  %v47_v23 = vadd.f32 %v39_v17, %v23_v16  ;;  %v20_v25 = vld [vmem:[%s354_s0 + $0x30] sm:$0xff]  ;;  %v17_v31 = vld [vmem:[%s354_s0 + $0x18] sm:$0xff] }
   0x7   :  { %v36_v26 = vld [vmem:[%s355_s1 + $0x30] sm:$0xff]  ;;  %v40_v28 = vmul.f32 0.9, %v32_v24  ;;  %v28_v29 = vmul.f32 0.1, %v20_v25  ;;  %v33_v32 = vld [vmem:[%s355_s1 + $0x18] sm:$0xff] }
   0x8   :  { %v50_v15 = vadd.f32 %v42_v10, %v26_v9  ;;  %221 = vmatprep.mubr.msk.f32.mxu0 %vm56_vm0, %v46_v14  ;;  %v51_v27 = vadd.f32 %v43_v21, %v27_v20  ;;  %v44_v30 = vmul.f32 0.9, %v36_v26  ;;  %v21_v33 = vld [vmem:[%s354_s0 + $0x38] sm:$0xff]  ;;  %v25_v36 = vmul.f32 0.1, %v17_v31 }
   0x9   :  { %222 = vmatmul.mubr.msk.f32.vlgmr.msra.gmra.mrb[0].mxu0 %vm56_vm0, %v47_v23  ;;  %v48_v34 = vadd.f32 %v40_v28, %v24_v22  ;;  %v41_v37 = vmul.f32 0.9, %v33_v32  ;;  %v37_v38 = vld [vmem:[%s355_s1 + $0x38] sm:$0xff]  ;;  %v29_v39 = vmul.f32 0.1, %v21_v33 }
   0xa   :  { %227 = vmatprep.mubr.msk.f32.mxu1 %vm56_vm0, %v50_v15  ;;  %v52_v35 = vadd.f32 %v44_v30, %v28_v29  ;;  %v45_v40 = vmul.f32 0.9, %v37_v38 }
   0xb   :  { %228 = vmatmul.mubr.msk.f32.vlgmr.msra.gmra.mrb[0].mxu1 %vm56_vm0, %v51_v27  ;;  %224 = vmatprep.mubr.msk.f32.mxu0 %vm56_vm0, %v48_v34  ;;  %v49_v41 = vadd.f32 %v41_v37, %v25_v36 }
   0xc   :  { %230 = vmatprep.mubr.msk.f32.mxu1 %vm56_vm0, %v52_v35  ;;  %v53_v42 = vadd.f32 %v45_v40, %v29_v39 }
   0xd   :  { %225 = vmatmul.mubr.msk.f32.gmra.mrb[2].mxu0 %vm56_vm0, %v49_v41 }
   0xf   :  { %231 = vmatmul.mubr.msk.f32.gmra.mrb[2].mxu1 %vm56_vm0, %v53_v42 }
  0xdc   :  { %v223_v43 = vpop.f32.mrb[0].mxu0 }
  0xdd   :  { %188 = vst.msk [vmem:[%s356_s3 + $0x8] sm:$0xff] %vm186_vm1, %v223_v43  ;;  %v147_v45 = vpop.f32.mrb[1].mxu0 }
  0xde   :  { %v229_v44 = vpop.f32.mrb[0].mxu1  ;;  %187 = vst.msk [vmem:[%s356_s3] sm:$0xff] %vm186_vm1, %v147_v45 }
  0xdf   :  { %192 = vst.msk [vmem:[%s356_s3 + $0x28] sm:$0xff] %vm186_vm1, %v229_v44  ;;  %v167_v46 = vpop.f32.mrb[1].mxu1 }
  0xe0   :  { %191 = vst.msk [vmem:[%s356_s3 + $0x20] sm:$0xff] %vm186_vm1, %v167_v46  ;;  %v226_v47 = vpop.f32.mrb[2].mxu0 }
  0xe1   :  { %190 = vst.msk [vmem:[%s356_s3 + $0x18] sm:$0xff] %vm186_vm1, %v226_v47  ;;  %v157_v49 = vpop.f32.mrb[3].mxu0 }
  0xe2   :  { %v232_v48 = vpop.f32.mrb[2].mxu1  ;;  %189 = vst.msk [vmem:[%s356_s3 + $0x10] sm:$0xff] %vm186_vm1, %v157_v49 }
  0xe3   :  { %194 = vst.msk [vmem:[%s356_s3 + $0x38] sm:$0xff] %vm186_vm1, %v232_v48  ;;  %v177_v50 = vpop.f32.mrb[3].mxu1 }
  0xe4   :  { %193 = vst.msk [vmem:[%s356_s3 + $0x30] sm:$0xff] %vm186_vm1, %v177_v50 }

</bundles_post_ra>
